<compile_context>
chip_gen: v7x
topology: tpu7x:2x2x1
jax: 0.10.0
libtpu: 0.0.40
codegen_flags: <defaults>
</compile_context>

<pallas_src>
import functools
import math

import jax
import jax.numpy as jnp
from jax import lax
from jax.experimental import pallas as pl
from jax.experimental.pallas import tpu as pltpu  # noqa: F401  (TPU backend)

# ---- model dims (small, consistent with the module) ----
B = 2            # batch
N = 8            # sequence length
H = 32           # hidden_size
NUM_HEADS = 4
HEAD_DIM = H // NUM_HEADS
I = 64           # intermediate_size
LN_EPS = 1e-7
SCALE_FACTOR = 1          # 1 + len(pos_att_type), pos_att_type = []
NEG_BIG = -1e30           # safe "masked" fill (exp underflows to 0 in fp32)

W_SLAB = 3 * H            # bias-slab lane width (96)


def _layer_norm(x, gamma, beta):
    # DebertaLayerNorm: fp32 mean / biased variance over last dim.
    mean = jnp.mean(x, axis=-1, keepdims=True)
    var = jnp.mean(jnp.square(x - mean), axis=-1, keepdims=True)
    return gamma * ((x - mean) * lax.rsqrt(var + LN_EPS)) + beta


def _gelu_exact(x):
    # torch.nn.functional.gelu default (erf-based).
    return 0.5 * x * (1.0 + lax.erf(x / jnp.sqrt(jnp.float32(2.0))))


def deberta_layer_kernel(hs_ref, aux_ref, w1_ref, wo_ref, b_ref, out_ref):
    hs = hs_ref[...]                                   # (B*N, H) f32

    # ---- unpack packed parameter slabs (static lane slices, no transposes) --
    w1 = w1_ref[...]                                   # (H, 3H + H + I)
    w_qkv = w1[:, 0:3 * H]                             # (H, 3H)  scale folded in
    w_so = w1[:, 3 * H:4 * H]                          # (H, H)
    w_i = w1[:, 4 * H:4 * H + I]                       # (H, I)

    b = b_ref[...]                                     # (8, 3H)
    b_qkv = b[0:1, :]                                  # (1, 3H)  [qb/scale, 0, vb]
    b_i = b[1:2, :I]
    b_so = b[2:3, :H]
    g1 = b[3:4, :H]
    be1 = b[4:5, :H]
    b_o = b[5:6, :H]
    g2 = b[6:7, :H]
    be2 = b[7:8, :H]

    # ---- fused QKV projection (one matmul, scale + biases pre-folded) -------
    qkv = jnp.dot(hs, w_qkv, preferred_element_type=jnp.float32) + b_qkv  # (B*N, 3H)
    q = qkv[:, 0:H].reshape(B, N, H)
    k = qkv[:, H:2 * H].reshape(B, N, H)
    v = qkv[:, 2 * H:3 * H].reshape(B, N, H)

    aux = aux_ref[...]                                 # (B, NUM_HEADS+1, N, N)
    keep = aux[:, NUM_HEADS]                           # (B, N, N) 1=attend 0=masked
    masked = keep == 0.0

    # ---- attention: batch-dim einsums, short unrolled loop over heads -------
    ctx_parts = []
    for h in range(NUM_HEADS):
        sl = slice(h * HEAD_DIM, (h + 1) * HEAD_DIM)
        qh = q[:, :, sl]                               # (B, N, d)
        kh = k[:, :, sl]
        vh = v[:, :, sl]
        s = jnp.einsum('bqd,bkd->bqk', qh, kh,
                       preferred_element_type=jnp.float32)        # (B, N, N)
        s = s * aux[:, h]                              # attention_enhencer
        # XSoftmax: masked_fill(-big) -> softmax(-1) -> masked_fill(0)
        s = jnp.where(masked, NEG_BIG, s)
        s = s - jnp.max(s, axis=-1, keepdims=True)
        e = jnp.exp(s)
        p = e * pl.reciprocal(jnp.sum(e, axis=-1, keepdims=True), approx=True)
        p = p * keep
        ctx_parts.append(jnp.einsum('bqk,bkd->bqd', p, vh,
                                    preferred_element_type=jnp.float32))
    context = jnp.concatenate(ctx_parts, axis=-1).reshape(B * N, H)

    # ---- DebertaSelfOutput: dense + residual + LayerNorm ---------------------
    so = jnp.dot(context, w_so, preferred_element_type=jnp.float32) + b_so
    attn_out = _layer_norm(so + hs, g1, be1)           # (B*N, H)

    # ---- DebertaIntermediate: dense + exact GELU -----------------------------
    inter = jnp.dot(attn_out, w_i, preferred_element_type=jnp.float32) + b_i
    inter = _gelu_exact(inter)                         # (B*N, I)

    # ---- DebertaOutput: dense + residual + LayerNorm -------------------------
    o = jnp.dot(inter, wo_ref[...], preferred_element_type=jnp.float32) + b_o
    out_ref[...] = _layer_norm(o + attn_out, g2, be2).astype(out_ref.dtype)


@jax.jit
def deberta_layer_v2(hidden_states, attention_mask, attention_enhencer, packed):
    """hidden_states: (B,N,H) f32, attention_mask: (B,1,N,N) int,
       attention_enhencer: (B,NUM_HEADS,N,N) f32, packed: (w1, wo_t, bias_slab)."""
    w1, wo_t, bias_slab = packed
    hs_flat = hidden_states.reshape(B * N, H)
    keep = (attention_mask != 0).astype(jnp.float32)                 # (B,1,N,N)
    aux = jnp.concatenate([attention_enhencer, keep], axis=1)        # (B,NH+1,N,N)

    out_flat = pl.pallas_call(
        deberta_layer_kernel,
        out_shape=jax.ShapeDtypeStruct((B * N, H), jnp.float32),
    )(hs_flat, aux, w1, wo_t, bias_slab)
    return out_flat.reshape(B, N, H)


# --------------------------- parameter handling ------------------------------

def make_raw_params(key):
    ks = jax.random.split(key, 12)
    std = 0.02
    # in_proj: nn.Linear(H, 3H, bias=False) -> weight (3H, H); rows are grouped
    # per head as [q_h (d rows), k_h (d rows), v_h (d rows)] (transpose_for_scores
    # + chunk(3, -1) semantics).
    w_inproj = jax.random.normal(ks[0], (3 * H, H), jnp.float32) * std
    w4 = w_inproj.reshape(NUM_HEADS, 3, HEAD_DIM, H)
    wq = w4[:, 0].reshape(H, H)
    wk = w4[:, 1].reshape(H, H)
    wv = w4[:, 2].reshape(H, H)
    qb = jax.random.normal(ks[1], (H,), jnp.float32) * std
    vb = jax.random.normal(ks[2], (H,), jnp.float32) * std
    wso = jax.random.normal(ks[3], (H, H), jnp.float32) * std
    bso = jax.random.normal(ks[4], (H,), jnp.float32) * std
    g1 = jnp.ones((H,), jnp.float32)
    be1 = jnp.zeros((H,), jnp.float32)
    wi = jax.random.normal(ks[5], (I, H), jnp.float32) * std
    bi = jax.random.normal(ks[6], (I,), jnp.float32) * std
    wo = jax.random.normal(ks[7], (H, I), jnp.float32) * std
    bo = jax.random.normal(ks[8], (H,), jnp.float32) * std
    g2 = jnp.ones((H,), jnp.float32)
    be2 = jnp.zeros((H,), jnp.float32)
    return (wq, wk, wv, qb, vb, wso, bso, g1, be1, wi, bi, wo, bo, g2, be2)


def pack_params(raw):
    """Pre-transpose / fold / pack everything into 3 slabs (host-side, once)."""
    (wq, wk, wv, qb, vb, wso, bso, g1, be1, wi, bi, wo, bo, g2, be2) = raw
    inv_scale = 1.0 / math.sqrt(HEAD_DIM * SCALE_FACTOR)

    w_qkv_t = jnp.concatenate([wq.T * inv_scale, wk.T, wv.T], axis=1)   # (H, 3H)
    w1 = jnp.concatenate([w_qkv_t, wso.T, wi.T], axis=1)                # (H, 3H+H+I)
    wo_t = wo.T                                                         # (I, H)

    def pad(vec):
        return jnp.pad(vec, (0, W_SLAB - vec.shape[0]))

    b_qkv = jnp.concatenate([qb * inv_scale, jnp.zeros((H,), jnp.float32), vb])
    bias_slab = jnp.stack(
        [b_qkv, pad(bi), pad(bso), pad(g1), pad(be1), pad(bo), pad(g2), pad(be2)],
        axis=0)                                                         # (8, 3H)
    return (w1, wo_t, bias_slab)


# --------------------------- pure-JAX reference ------------------------------

def reference_forward(hs, mask, enh, raw):
    (wq, wk, wv, qb, vb, wso, bso, g1, be1, wi, bi, wo, bo, g2, be2) = raw

    def ln(x, g, b):
        m = jnp.mean(x, -1, keepdims=True)
        var = jnp.mean((x - m) ** 2, -1, keepdims=True)
        return g * ((x - m) / jnp.sqrt(var + LN_EPS)) + b

    scale = jnp.sqrt(jnp.float32(HEAD_DIM * SCALE_FACTOR))
    q = (hs @ wq.T + qb) / scale
    k = hs @ wk.T
    v = hs @ wv.T + vb

    def heads(x):
        return x.reshape(B, N, NUM_HEADS, HEAD_DIM).transpose(0, 2, 1, 3)

    qh, kh, vh = heads(q), heads(k), heads(v)
    s = jnp.einsum('bhqd,bhkd->bhqk', qh, kh) * enh
    rmask = mask == 0                                                   # (B,1,N,N)
    s = jnp.where(rmask, jnp.finfo(jnp.float32).min, s)
    p = jax.nn.softmax(s, axis=-1)
    p = jnp.where(rmask, 0.0, p)
    ctx = jnp.einsum('bhqk,bhkd->bhqd', p, vh).transpose(0, 2, 1, 3).reshape(B, N, H)

    so = ctx @ wso.T + bso
    a = ln(so + hs, g1, be1)
    it = jax.nn.gelu(a @ wi.T + bi, approximate=False)
    o = it @ wo.T + bo
    return ln(o + a, g2, be2)


if __name__ == "__main__":
    key = jax.random.PRNGKey(0)
    k_hs, k_enh, k_params = jax.random.split(key, 3)

    hidden_states = jax.random.normal(k_hs, (B, N, H), jnp.float32)
    # mask: first 6 tokens valid, last 2 masked (same for every query row)
    valid = (jnp.arange(N) < 6).astype(jnp.int32)
    attention_mask = jnp.broadcast_to(
        valid[None, None, None, :], (B, 1, N, N)).astype(jnp.int32)
    attention_enhencer = 1.0 + 0.1 * jax.random.normal(
        k_enh, (B, NUM_HEADS, N, N), jnp.float32)

    raw = make_raw_params(k_params)
    packed = pack_params(raw)

    out = deberta_layer_v2(hidden_states, attention_mask, attention_enhencer, packed)
    out = jax.block_until_ready(out)

    ref = reference_forward(hidden_states, attention_mask, attention_enhencer, raw)
    max_err = float(jnp.max(jnp.abs(out - ref)))

    assert out.shape == (B, N, H)
    assert bool(jnp.all(jnp.isfinite(out)))
    assert max_err < 1e-2, f"kernel/reference mismatch: max abs err {max_err}"
    print("KERNEL_OK")
</pallas_src>

<mosaic_0001>
module attributes {stable_mosaic.version = 11 : i64} {
  func.func @deberta_layer_kernel(%arg0: memref<16x32xf32, #tpu.memory_space<vmem>>, %arg1: memref<2x5x8x8xf32, #tpu.memory_space<vmem>>, %arg2: memref<32x192xf32, #tpu.memory_space<vmem>>, %arg3: memref<64x32xf32, #tpu.memory_space<vmem>>, %arg4: memref<8x96xf32, #tpu.memory_space<vmem>>, %arg5: memref<16x32xf32, #tpu.memory_space<vmem>>) attributes {dimension_semantics = [], scalar_prefetch = 0 : i64, scratch_operands = 0 : i64, tpu.core_type = #tpu.core_type<tc>} {
    %c0 = arith.constant 0 : index
    %c0_0 = arith.constant 0 : index
    %0 = vector.load %arg0[%c0, %c0_0] : memref<16x32xf32, #tpu.memory_space<vmem>>, vector<16x32xf32>
    %c0_1 = arith.constant 0 : index
    %c0_2 = arith.constant 0 : index
    %1 = vector.load %arg2[%c0_1, %c0_2] : memref<32x192xf32, #tpu.memory_space<vmem>>, vector<32x192xf32>
    %2 = vector.extract_strided_slice %1 {offsets = [0, 0], sizes = [32, 96], strides = [1, 1]} : vector<32x192xf32> to vector<32x96xf32>
    %3 = vector.extract_strided_slice %1 {offsets = [0, 96], sizes = [32, 32], strides = [1, 1]} : vector<32x192xf32> to vector<32x32xf32>
    %4 = vector.extract_strided_slice %1 {offsets = [0, 128], sizes = [32, 64], strides = [1, 1]} : vector<32x192xf32> to vector<32x64xf32>
    %c0_3 = arith.constant 0 : index
    %c0_4 = arith.constant 0 : index
    %5 = vector.load %arg4[%c0_3, %c0_4] : memref<8x96xf32, #tpu.memory_space<vmem>>, vector<8x96xf32>
    %6 = vector.extract_strided_slice %5 {offsets = [0, 0], sizes = [1, 96], strides = [1, 1]} : vector<8x96xf32> to vector<1x96xf32>
    %7 = vector.extract_strided_slice %5 {offsets = [1, 0], sizes = [1, 64], strides = [1, 1]} : vector<8x96xf32> to vector<1x64xf32>
    %8 = vector.extract_strided_slice %5 {offsets = [2, 0], sizes = [1, 32], strides = [1, 1]} : vector<8x96xf32> to vector<1x32xf32>
    %9 = vector.extract_strided_slice %5 {offsets = [3, 0], sizes = [1, 32], strides = [1, 1]} : vector<8x96xf32> to vector<1x32xf32>
    %10 = vector.extract_strided_slice %5 {offsets = [4, 0], sizes = [1, 32], strides = [1, 1]} : vector<8x96xf32> to vector<1x32xf32>
    %11 = vector.extract_strided_slice %5 {offsets = [5, 0], sizes = [1, 32], strides = [1, 1]} : vector<8x96xf32> to vector<1x32xf32>
    %12 = vector.extract_strided_slice %5 {offsets = [6, 0], sizes = [1, 32], strides = [1, 1]} : vector<8x96xf32> to vector<1x32xf32>
    %13 = vector.extract_strided_slice %5 {offsets = [7, 0], sizes = [1, 32], strides = [1, 1]} : vector<8x96xf32> to vector<1x32xf32>
    %cst = arith.constant dense<0.000000e+00> : vector<16x96xf32>
    %14 = tpu.matmul %0, %2, %cst {dimension_numbers = #tpu.dot_dimension_numbers<[1], [0], [0], [1], [0, 0, 1, 1], [], []>} : vector<16x32xf32>, vector<32x96xf32>, vector<16x96xf32> -> vector<16x96xf32>
    %15 = vector.broadcast %6 : vector<1x96xf32> to vector<16x96xf32>
    %16 = arith.addf %14, %15 : vector<16x96xf32>
    %17 = vector.extract_strided_slice %16 {offsets = [0, 0], sizes = [16, 32], strides = [1, 1]} : vector<16x96xf32> to vector<16x32xf32>
    %18 = vector.shape_cast %17 : vector<16x32xf32> to vector<2x8x32xf32>
    %19 = vector.extract_strided_slice %16 {offsets = [0, 32], sizes = [16, 32], strides = [1, 1]} : vector<16x96xf32> to vector<16x32xf32>
    %20 = vector.shape_cast %19 : vector<16x32xf32> to vector<2x8x32xf32>
    %21 = vector.extract_strided_slice %16 {offsets = [0, 64], sizes = [16, 32], strides = [1, 1]} : vector<16x96xf32> to vector<16x32xf32>
    %22 = vector.shape_cast %21 : vector<16x32xf32> to vector<2x8x32xf32>
    %c0_5 = arith.constant 0 : index
    %c0_6 = arith.constant 0 : index
    %c0_7 = arith.constant 0 : index
    %c0_8 = arith.constant 0 : index
    %23 = vector.load %arg1[%c0_5, %c0_6, %c0_7, %c0_8] : memref<2x5x8x8xf32, #tpu.memory_space<vmem>>, vector<2x5x8x8xf32>
    %24 = vector.extract_strided_slice %23 {offsets = [0, 4, 0, 0], sizes = [2, 1, 8, 8], strides = [1, 1, 1, 1]} : vector<2x5x8x8xf32> to vector<2x1x8x8xf32>
    %25 = vector.shape_cast %24 : vector<2x1x8x8xf32> to vector<2x8x8xf32>
    %cst_9 = arith.constant 0.000000e+00 : f32
    %26 = vector.broadcast %cst_9 : f32 to vector<2x8x8xf32>
    %27 = arith.cmpf oeq, %25, %26 : vector<2x8x8xf32>
    %28 = vector.extract_strided_slice %18 {offsets = [0, 0, 0], sizes = [2, 8, 8], strides = [1, 1, 1]} : vector<2x8x32xf32> to vector<2x8x8xf32>
    %29 = vector.extract_strided_slice %20 {offsets = [0, 0, 0], sizes = [2, 8, 8], strides = [1, 1, 1]} : vector<2x8x32xf32> to vector<2x8x8xf32>
    %30 = vector.extract_strided_slice %22 {offsets = [0, 0, 0], sizes = [2, 8, 8], strides = [1, 1, 1]} : vector<2x8x32xf32> to vector<2x8x8xf32>
    "tpu.trace_start"() <{level = 10 : i32, message = "bqd,bkd->bqk"}> : () -> ()
    %cst_10 = arith.constant dense<0.000000e+00> : vector<2x8x8xf32>
    %31 = tpu.matmul %28, %29, %cst_10 {dimension_numbers = #tpu.dot_dimension_numbers<[2], [2], [1], [1], [0, 0, 0, 1, 1, 1], [0], [0]>} : vector<2x8x8xf32>, vector<2x8x8xf32>, vector<2x8x8xf32> -> vector<2x8x8xf32>
    "tpu.trace_stop"() : () -> ()
    %32 = vector.extract_strided_slice %23 {offsets = [0, 0, 0, 0], sizes = [2, 1, 8, 8], strides = [1, 1, 1, 1]} : vector<2x5x8x8xf32> to vector<2x1x8x8xf32>
    %33 = vector.shape_cast %32 : vector<2x1x8x8xf32> to vector<2x8x8xf32>
    %34 = arith.mulf %31, %33 : vector<2x8x8xf32>
    %cst_11 = arith.constant -1.000000e+30 : f32
    %35 = vector.broadcast %cst_11 : f32 to vector<2x8x8xf32>
    %36 = arith.select %27, %35, %34 : vector<2x8x8xi1>, vector<2x8x8xf32>
    %cst_12 = arith.constant dense<0xFF800000> : vector<2x8xf32>
    %37 = vector.multi_reduction <maximumf>, %36, %cst_12 [2] : vector<2x8x8xf32> to vector<2x8xf32>
    %38 = vector.shape_cast %37 : vector<2x8xf32> to vector<2x8x1xf32>
    %39 = vector.broadcast %38 : vector<2x8x1xf32> to vector<2x8x8xf32>
    %40 = arith.subf %36, %39 : vector<2x8x8xf32>
    %41 = math.exp %40 : vector<2x8x8xf32>
    %cst_13 = arith.constant dense<0.000000e+00> : vector<2x8xf32>
    %42 = vector.multi_reduction <add>, %41, %cst_13 [2] : vector<2x8x8xf32> to vector<2x8xf32>
    %43 = vector.shape_cast %42 : vector<2x8xf32> to vector<2x8x1xf32>
    %44 = tpu.reciprocal %43 {approx = true} : vector<2x8x1xf32> -> vector<2x8x1xf32>
    %45 = vector.broadcast %44 : vector<2x8x1xf32> to vector<2x8x8xf32>
    %46 = arith.mulf %41, %45 : vector<2x8x8xf32>
    %47 = arith.mulf %46, %25 : vector<2x8x8xf32>
    "tpu.trace_start"() <{level = 10 : i32, message = "bqk,bkd->bqd"}> : () -> ()
    %cst_14 = arith.constant dense<0.000000e+00> : vector<2x8x8xf32>
    %48 = tpu.matmul %47, %30, %cst_14 {dimension_numbers = #tpu.dot_dimension_numbers<[2], [1], [1], [2], [0, 0, 0, 1, 1, 2], [0], [0]>} : vector<2x8x8xf32>, vector<2x8x8xf32>, vector<2x8x8xf32> -> vector<2x8x8xf32>
    "tpu.trace_stop"() : () -> ()
    %49 = vector.extract_strided_slice %18 {offsets = [0, 0, 8], sizes = [2, 8, 8], strides = [1, 1, 1]} : vector<2x8x32xf32> to vector<2x8x8xf32>
    %50 = vector.extract_strided_slice %20 {offsets = [0, 0, 8], sizes = [2, 8, 8], strides = [1, 1, 1]} : vector<2x8x32xf32> to vector<2x8x8xf32>
    %51 = vector.extract_strided_slice %22 {offsets = [0, 0, 8], sizes = [2, 8, 8], strides = [1, 1, 1]} : vector<2x8x32xf32> to vector<2x8x8xf32>
    "tpu.trace_start"() <{level = 10 : i32, message = "bqd,bkd->bqk"}> : () -> ()
    %cst_15 = arith.constant dense<0.000000e+00> : vector<2x8x8xf32>
    %52 = tpu.matmul %49, %50, %cst_15 {dimension_numbers = #tpu.dot_dimension_numbers<[2], [2], [1], [1], [0, 0, 0, 1, 1, 1], [0], [0]>} : vector<2x8x8xf32>, vector<2x8x8xf32>, vector<2x8x8xf32> -> vector<2x8x8xf32>
    "tpu.trace_stop"() : () -> ()
    %53 = vector.extract_strided_slice %23 {offsets = [0, 1, 0, 0], sizes = [2, 1, 8, 8], strides = [1, 1, 1, 1]} : vector<2x5x8x8xf32> to vector<2x1x8x8xf32>
    %54 = vector.shape_cast %53 : vector<2x1x8x8xf32> to vector<2x8x8xf32>
    %55 = arith.mulf %52, %54 : vector<2x8x8xf32>
    %cst_16 = arith.constant -1.000000e+30 : f32
    %56 = vector.broadcast %cst_16 : f32 to vector<2x8x8xf32>
    %57 = arith.select %27, %56, %55 : vector<2x8x8xi1>, vector<2x8x8xf32>
    %cst_17 = arith.constant dense<0xFF800000> : vector<2x8xf32>
    %58 = vector.multi_reduction <maximumf>, %57, %cst_17 [2] : vector<2x8x8xf32> to vector<2x8xf32>
    %59 = vector.shape_cast %58 : vector<2x8xf32> to vector<2x8x1xf32>
    %60 = vector.broadcast %59 : vector<2x8x1xf32> to vector<2x8x8xf32>
    %61 = arith.subf %57, %60 : vector<2x8x8xf32>
    %62 = math.exp %61 : vector<2x8x8xf32>
    %cst_18 = arith.constant dense<0.000000e+00> : vector<2x8xf32>
    %63 = vector.multi_reduction <add>, %62, %cst_18 [2] : vector<2x8x8xf32> to vector<2x8xf32>
    %64 = vector.shape_cast %63 : vector<2x8xf32> to vector<2x8x1xf32>
    %65 = tpu.reciprocal %64 {approx = true} : vector<2x8x1xf32> -> vector<2x8x1xf32>
    %66 = vector.broadcast %65 : vector<2x8x1xf32> to vector<2x8x8xf32>
    %67 = arith.mulf %62, %66 : vector<2x8x8xf32>
    %68 = arith.mulf %67, %25 : vector<2x8x8xf32>
    "tpu.trace_start"() <{level = 10 : i32, message = "bqk,bkd->bqd"}> : () -> ()
    %cst_19 = arith.constant dense<0.000000e+00> : vector<2x8x8xf32>
    %69 = tpu.matmul %68, %51, %cst_19 {dimension_numbers = #tpu.dot_dimension_numbers<[2], [1], [1], [2], [0, 0, 0, 1, 1, 2], [0], [0]>} : vector<2x8x8xf32>, vector<2x8x8xf32>, vector<2x8x8xf32> -> vector<2x8x8xf32>
    "tpu.trace_stop"() : () -> ()
    %70 = vector.extract_strided_slice %18 {offsets = [0, 0, 16], sizes = [2, 8, 8], strides = [1, 1, 1]} : vector<2x8x32xf32> to vector<2x8x8xf32>
    %71 = vector.extract_strided_slice %20 {offsets = [0, 0, 16], sizes = [2, 8, 8], strides = [1, 1, 1]} : vector<2x8x32xf32> to vector<2x8x8xf32>
    %72 = vector.extract_strided_slice %22 {offsets = [0, 0, 16], sizes = [2, 8, 8], strides = [1, 1, 1]} : vector<2x8x32xf32> to vector<2x8x8xf32>
    "tpu.trace_start"() <{level = 10 : i32, message = "bqd,bkd->bqk"}> : () -> ()
    %cst_20 = arith.constant dense<0.000000e+00> : vector<2x8x8xf32>
    %73 = tpu.matmul %70, %71, %cst_20 {dimension_numbers = #tpu.dot_dimension_numbers<[2], [2], [1], [1], [0, 0, 0, 1, 1, 1], [0], [0]>} : vector<2x8x8xf32>, vector<2x8x8xf32>, vector<2x8x8xf32> -> vector<2x8x8xf32>
    "tpu.trace_stop"() : () -> ()
    %74 = vector.extract_strided_slice %23 {offsets = [0, 2, 0, 0], sizes = [2, 1, 8, 8], strides = [1, 1, 1, 1]} : vector<2x5x8x8xf32> to vector<2x1x8x8xf32>
    %75 = vector.shape_cast %74 : vector<2x1x8x8xf32> to vector<2x8x8xf32>
    %76 = arith.mulf %73, %75 : vector<2x8x8xf32>
    %cst_21 = arith.constant -1.000000e+30 : f32
    %77 = vector.broadcast %cst_21 : f32 to vector<2x8x8xf32>
    %78 = arith.select %27, %77, %76 : vector<2x8x8xi1>, vector<2x8x8xf32>
    %cst_22 = arith.constant dense<0xFF800000> : vector<2x8xf32>
    %79 = vector.multi_reduction <maximumf>, %78, %cst_22 [2] : vector<2x8x8xf32> to vector<2x8xf32>
    %80 = vector.shape_cast %79 : vector<2x8xf32> to vector<2x8x1xf32>
    %81 = vector.broadcast %80 : vector<2x8x1xf32> to vector<2x8x8xf32>
    %82 = arith.subf %78, %81 : vector<2x8x8xf32>
    %83 = math.exp %82 : vector<2x8x8xf32>
    %cst_23 = arith.constant dense<0.000000e+00> : vector<2x8xf32>
    %84 = vector.multi_reduction <add>, %83, %cst_23 [2] : vector<2x8x8xf32> to vector<2x8xf32>
    %85 = vector.shape_cast %84 : vector<2x8xf32> to vector<2x8x1xf32>
    %86 = tpu.reciprocal %85 {approx = true} : vector<2x8x1xf32> -> vector<2x8x1xf32>
    %87 = vector.broadcast %86 : vector<2x8x1xf32> to vector<2x8x8xf32>
    %88 = arith.mulf %83, %87 : vector<2x8x8xf32>
    %89 = arith.mulf %88, %25 : vector<2x8x8xf32>
    "tpu.trace_start"() <{level = 10 : i32, message = "bqk,bkd->bqd"}> : () -> ()
    %cst_24 = arith.constant dense<0.000000e+00> : vector<2x8x8xf32>
    %90 = tpu.matmul %89, %72, %cst_24 {dimension_numbers = #tpu.dot_dimension_numbers<[2], [1], [1], [2], [0, 0, 0, 1, 1, 2], [0], [0]>} : vector<2x8x8xf32>, vector<2x8x8xf32>, vector<2x8x8xf32> -> vector<2x8x8xf32>
    "tpu.trace_stop"() : () -> ()
    %91 = vector.extract_strided_slice %18 {offsets = [0, 0, 24], sizes = [2, 8, 8], strides = [1, 1, 1]} : vector<2x8x32xf32> to vector<2x8x8xf32>
    %92 = vector.extract_strided_slice %20 {offsets = [0, 0, 24], sizes = [2, 8, 8], strides = [1, 1, 1]} : vector<2x8x32xf32> to vector<2x8x8xf32>
    %93 = vector.extract_strided_slice %22 {offsets = [0, 0, 24], sizes = [2, 8, 8], strides = [1, 1, 1]} : vector<2x8x32xf32> to vector<2x8x8xf32>
    "tpu.trace_start"() <{level = 10 : i32, message = "bqd,bkd->bqk"}> : () -> ()
    %cst_25 = arith.constant dense<0.000000e+00> : vector<2x8x8xf32>
    %94 = tpu.matmul %91, %92, %cst_25 {dimension_numbers = #tpu.dot_dimension_numbers<[2], [2], [1], [1], [0, 0, 0, 1, 1, 1], [0], [0]>} : vector<2x8x8xf32>, vector<2x8x8xf32>, vector<2x8x8xf32> -> vector<2x8x8xf32>
    "tpu.trace_stop"() : () -> ()
    %95 = vector.extract_strided_slice %23 {offsets = [0, 3, 0, 0], sizes = [2, 1, 8, 8], strides = [1, 1, 1, 1]} : vector<2x5x8x8xf32> to vector<2x1x8x8xf32>
    %96 = vector.shape_cast %95 : vector<2x1x8x8xf32> to vector<2x8x8xf32>
    %97 = arith.mulf %94, %96 : vector<2x8x8xf32>
    %cst_26 = arith.constant -1.000000e+30 : f32
    %98 = vector.broadcast %cst_26 : f32 to vector<2x8x8xf32>
    %99 = arith.select %27, %98, %97 : vector<2x8x8xi1>, vector<2x8x8xf32>
    %cst_27 = arith.constant dense<0xFF800000> : vector<2x8xf32>
    %100 = vector.multi_reduction <maximumf>, %99, %cst_27 [2] : vector<2x8x8xf32> to vector<2x8xf32>
    %101 = vector.shape_cast %100 : vector<2x8xf32> to vector<2x8x1xf32>
    %102 = vector.broadcast %101 : vector<2x8x1xf32> to vector<2x8x8xf32>
    %103 = arith.subf %99, %102 : vector<2x8x8xf32>
    %104 = math.exp %103 : vector<2x8x8xf32>
    %cst_28 = arith.constant dense<0.000000e+00> : vector<2x8xf32>
    %105 = vector.multi_reduction <add>, %104, %cst_28 [2] : vector<2x8x8xf32> to vector<2x8xf32>
    %106 = vector.shape_cast %105 : vector<2x8xf32> to vector<2x8x1xf32>
    %107 = tpu.reciprocal %106 {approx = true} : vector<2x8x1xf32> -> vector<2x8x1xf32>
    %108 = vector.broadcast %107 : vector<2x8x1xf32> to vector<2x8x8xf32>
    %109 = arith.mulf %104, %108 : vector<2x8x8xf32>
    %110 = arith.mulf %109, %25 : vector<2x8x8xf32>
    "tpu.trace_start"() <{level = 10 : i32, message = "bqk,bkd->bqd"}> : () -> ()
    %cst_29 = arith.constant dense<0.000000e+00> : vector<2x8x8xf32>
    %111 = tpu.matmul %110, %93, %cst_29 {dimension_numbers = #tpu.dot_dimension_numbers<[2], [1], [1], [2], [0, 0, 0, 1, 1, 2], [0], [0]>} : vector<2x8x8xf32>, vector<2x8x8xf32>, vector<2x8x8xf32> -> vector<2x8x8xf32>
    "tpu.trace_stop"() : () -> ()
    %112 = tpu.concatenate %48, %69, %90, %111 in 2 : vector<2x8x8xf32>, vector<2x8x8xf32>, vector<2x8x8xf32>, vector<2x8x8xf32> -> vector<2x8x32xf32>
    %113 = vector.shape_cast %112 : vector<2x8x32xf32> to vector<16x32xf32>
    %cst_30 = arith.constant dense<0.000000e+00> : vector<16x32xf32>
    %114 = tpu.matmul %113, %3, %cst_30 {dimension_numbers = #tpu.dot_dimension_numbers<[1], [0], [0], [1], [0, 0, 1, 1], [], []>} : vector<16x32xf32>, vector<32x32xf32>, vector<16x32xf32> -> vector<16x32xf32>
    %115 = vector.broadcast %8 : vector<1x32xf32> to vector<16x32xf32>
    %116 = arith.addf %114, %115 : vector<16x32xf32>
    %117 = arith.addf %116, %0 : vector<16x32xf32>
    %cst_31 = arith.constant dense<0.000000e+00> : vector<16xf32>
    %118 = vector.multi_reduction <add>, %117, %cst_31 [1] : vector<16x32xf32> to vector<16xf32>
    %119 = vector.shape_cast %118 : vector<16xf32> to vector<16x1xf32>
    %cst_32 = arith.constant 3.200000e+01 : f32
    %120 = vector.broadcast %cst_32 : f32 to vector<16x1xf32>
    %121 = arith.divf %119, %120 : vector<16x1xf32>
    %122 = vector.broadcast %121 : vector<16x1xf32> to vector<16x32xf32>
    %123 = arith.subf %117, %122 : vector<16x32xf32>
    %124 = arith.mulf %123, %123 : vector<16x32xf32>
    %cst_33 = arith.constant dense<0.000000e+00> : vector<16xf32>
    %125 = vector.multi_reduction <add>, %124, %cst_33 [1] : vector<16x32xf32> to vector<16xf32>
    %126 = vector.shape_cast %125 : vector<16xf32> to vector<16x1xf32>
    %cst_34 = arith.constant 3.200000e+01 : f32
    %127 = vector.broadcast %cst_34 : f32 to vector<16x1xf32>
    %128 = arith.divf %126, %127 : vector<16x1xf32>
    %129 = vector.broadcast %121 : vector<16x1xf32> to vector<16x32xf32>
    %130 = arith.subf %117, %129 : vector<16x32xf32>
    %cst_35 = arith.constant 1.000000e-07 : f32
    %131 = vector.broadcast %cst_35 : f32 to vector<16x1xf32>
    %132 = arith.addf %128, %131 : vector<16x1xf32>
    %133 = math.rsqrt %132 : vector<16x1xf32>
    %134 = vector.broadcast %133 : vector<16x1xf32> to vector<16x32xf32>
    %135 = arith.mulf %130, %134 : vector<16x32xf32>
    %136 = vector.broadcast %9 : vector<1x32xf32> to vector<16x32xf32>
    %137 = arith.mulf %136, %135 : vector<16x32xf32>
    %138 = vector.broadcast %10 : vector<1x32xf32> to vector<16x32xf32>
    %139 = arith.addf %137, %138 : vector<16x32xf32>
    %cst_36 = arith.constant dense<0.000000e+00> : vector<16x64xf32>
    %140 = tpu.matmul %139, %4, %cst_36 {dimension_numbers = #tpu.dot_dimension_numbers<[1], [0], [0], [1], [0, 0, 1, 1], [], []>} : vector<16x32xf32>, vector<32x64xf32>, vector<16x64xf32> -> vector<16x64xf32>
    %141 = vector.broadcast %7 : vector<1x64xf32> to vector<16x64xf32>
    %142 = arith.addf %140, %141 : vector<16x64xf32>
    %cst_37 = arith.constant 5.000000e-01 : f32
    %143 = vector.broadcast %cst_37 : f32 to vector<16x64xf32>
    %144 = arith.mulf %143, %142 : vector<16x64xf32>
    %cst_38 = arith.constant 2.000000e+00 : f32
    %145 = math.sqrt %cst_38 : f32
    %146 = vector.broadcast %145 : f32 to vector<16x64xf32>
    %147 = arith.divf %142, %146 : vector<16x64xf32>
    %148 = math.erf %147 : vector<16x64xf32>
    %cst_39 = arith.constant 1.000000e+00 : f32
    %149 = vector.broadcast %cst_39 : f32 to vector<16x64xf32>
    %150 = arith.addf %149, %148 : vector<16x64xf32>
    %151 = arith.mulf %144, %150 : vector<16x64xf32>
    %c0_40 = arith.constant 0 : index
    %c0_41 = arith.constant 0 : index
    %152 = vector.load %arg3[%c0_40, %c0_41] : memref<64x32xf32, #tpu.memory_space<vmem>>, vector<64x32xf32>
    %cst_42 = arith.constant dense<0.000000e+00> : vector<16x32xf32>
    %153 = tpu.matmul %151, %152, %cst_42 {dimension_numbers = #tpu.dot_dimension_numbers<[1], [0], [0], [1], [0, 0, 1, 1], [], []>} : vector<16x64xf32>, vector<64x32xf32>, vector<16x32xf32> -> vector<16x32xf32>
    %154 = vector.broadcast %11 : vector<1x32xf32> to vector<16x32xf32>
    %155 = arith.addf %153, %154 : vector<16x32xf32>
    %156 = arith.addf %155, %139 : vector<16x32xf32>
    %cst_43 = arith.constant dense<0.000000e+00> : vector<16xf32>
    %157 = vector.multi_reduction <add>, %156, %cst_43 [1] : vector<16x32xf32> to vector<16xf32>
    %158 = vector.shape_cast %157 : vector<16xf32> to vector<16x1xf32>
    %cst_44 = arith.constant 3.200000e+01 : f32
    %159 = vector.broadcast %cst_44 : f32 to vector<16x1xf32>
    %160 = arith.divf %158, %159 : vector<16x1xf32>
    %161 = vector.broadcast %160 : vector<16x1xf32> to vector<16x32xf32>
    %162 = arith.subf %156, %161 : vector<16x32xf32>
    %163 = arith.mulf %162, %162 : vector<16x32xf32>
    %cst_45 = arith.constant dense<0.000000e+00> : vector<16xf32>
    %164 = vector.multi_reduction <add>, %163, %cst_45 [1] : vector<16x32xf32> to vector<16xf32>
    %165 = vector.shape_cast %164 : vector<16xf32> to vector<16x1xf32>
    %cst_46 = arith.constant 3.200000e+01 : f32
    %166 = vector.broadcast %cst_46 : f32 to vector<16x1xf32>
    %167 = arith.divf %165, %166 : vector<16x1xf32>
    %168 = vector.broadcast %160 : vector<16x1xf32> to vector<16x32xf32>
    %169 = arith.subf %156, %168 : vector<16x32xf32>
    %cst_47 = arith.constant 1.000000e-07 : f32
    %170 = vector.broadcast %cst_47 : f32 to vector<16x1xf32>
    %171 = arith.addf %167, %170 : vector<16x1xf32>
    %172 = math.rsqrt %171 : vector<16x1xf32>
    %173 = vector.broadcast %172 : vector<16x1xf32> to vector<16x32xf32>
    %174 = arith.mulf %169, %173 : vector<16x32xf32>
    %175 = vector.broadcast %12 : vector<1x32xf32> to vector<16x32xf32>
    %176 = arith.mulf %175, %174 : vector<16x32xf32>
    %177 = vector.broadcast %13 : vector<1x32xf32> to vector<16x32xf32>
    %178 = arith.addf %176, %177 : vector<16x32xf32>
    %c0_48 = arith.constant 0 : index
    %c0_49 = arith.constant 0 : index
    %179 = vector.load %arg5[%c0_48, %c0_49] : memref<16x32xf32, #tpu.memory_space<vmem>>, vector<16x32xf32>
    tpu.vector_store %arg5[%c0_48, %c0_49], %178 {strides = array<i32>} : memref<16x32xf32, #tpu.memory_space<vmem>>, vector<16x32xf32>,
    return
  }
}

</mosaic_0001>

<bundles_post_ra>
// kernel: deberta_layer_v2.1
= control target key start
LH: loop header
LB: loop body
LE: loop exit
PB: predicated region body
PF: predicated region fallthrough
CT: control target
= control target key end

     0   :  { %vm36_vm0 = vcmask 261120   ;;  %s2632_s0 = inlined_call_operand.vmem [shape: f32[16,32], index: 0, kind: input, shape index: {}]   ;;  %s2633_s1 = inlined_call_operand.vmem [shape: f32[2,5,8,8], index: 1, kind: input, shape index: {}]   ;;  %s2634_s2 = inlined_call_operand.vmem [shape: f32[32,192], index: 2, kind: input, shape index: {}]   ;;  %s2635_s3 = inlined_call_operand.vmem [shape: f32[64,32], index: 3, kind: input, shape index: {}]   ;;  %s2636_s4 = inlined_call_operand.vmem [shape: f32[8,96], index: 4, kind: input, shape index: {}]   ;;  %s2637_s5 = inlined_call_operand.hbm [shape: f32[16,32], index: 5, kind: output, shape index: {}]  }
   0x1   :  { %v2308_v0 = vld [vmem:[%s2634_s2] sm:$0xff]  ;;  %v2313_v1 = vld [vmem:[%s2634_s2 + $0x10] sm:$0xff] }
   0x2   :  { %v2318_v2 = vld [vmem:[%s2634_s2 + $0x20] sm:$0xff]  ;;  %v2178_v3 = vpack.i.bf16 %v2313_v1, %v2308_v0  ;;  %v2119_v4 = vpack.c.bf16 %v2313_v1, %v2308_v0  ;;  %v2327_v5 = vld [vmem:[%s2634_s2 + $0x30] sm:$0xff] }
   0x3   :  { %v2332_v6 = vld [vmem:[%s2632_s0] sm:$0xff]  ;;  %v2123_v7 = vpack.c.bf16 %v2327_v5, %v2318_v2 }
   0x4   :  { %1995 = vmatprep.mubr.msk.f32.mxu1 %vm36_vm0, %v2332_v6 }
   0x5   :  { %10 = vsyncpa [#allocation3], 0  ;;  %2120 = vmatprep.subr.bf16.mxu1 %v2119_v4  ;;  %v2341_v8 = vld [vmem:[%s2632_s0 + $0x8] sm:$0xff]  ;;  %v2256_v9 = vmov 0.0   ;;  %v32_v10 = vlaneseq  ;;  %vm2257_vm1 = vmmov 0   ;;  %v2357_v13 = vld [vmem:[%s2636_s4] sm:$0xff] }
   0x6   :  { %2122 = vmatpush3.bf16.msra.mxu1 %v2119_v4  ;;  %2008 = vmatprep.subr.mxu0 %v2256_v9  ;;  %s2258_s6 = smov 96   ;;  %vm133_vm2 = vcmask 64512   ;;  %v2381_v21 = vld [vmem:[%s2633_s1 + $0x20] sm:$0xff]  ;;  %v2390_v26 = vld [vmem:[%s2633_s1 + $0x48] sm:$0xff]  ;;  %s2259_s14 = smov 64   ;;  %vm1502_vm5 = vcmask 195584  }
   0x7   :  { %2124 = vmatprep.subr.bf16.mxu1 %v2123_v7  ;;  %v2347_v11 = vshrl.u32 %v32_v10, 7  ;;  %2010 = vmatprep.mubr.msk.f32.mxu0 %vm2257_vm1, %v2256_v9  ;;  %v118_v22 = vld [vmem:[%s2633_s1] sm:$0xff]  ;;  %vm128_vm3 = vcmp.eq.f32.partialorder %v2381_v21, 0.0  ;;  %v123_v27 = vld [vmem:[%s2633_s1 + $0x28] sm:$0xff]  ;;  %vm129_vm4 = vcmp.eq.f32.partialorder %v2390_v26, 0.0  ;;  %s2260_s15 = smov 88  }
   0x8   :  { %s2261_s16 = smov 120   ;;  %v119_v61 = vld [vmem:[%s2633_s1 + $0x8] sm:$0xff]  ;;  %s2262_s21 = smov 56   ;;  %vm1499_vm6 = vcmask 130048   ;;  %vm1755_vm7 = vcmask 523264  }
   0x9   :  { %v34_v12 = vsub.s32 0, %v2347_v11  ;;  %s2263_s22 = smov 80   ;;  %s2264_s23 = smov 112  }
   0xa   :  { %2126 = vmatpush3.bf16.msra.mxu1 %v2123_v7  ;;  %s2265_s28 = smov 48   ;;  %s2266_s29 = smov 72  }
   0xb   :  { %1998 = vmatprep.subr.mxu1 %v2256_v9  ;;  %v35_v14 = vrot.slane %v2357_v13, %v34_v12  ;;  %v124_v12 = vld [vmem:[%s2633_s1 + $0x30] sm:$0xff]  ;;  %s2267_s0 = smov 104   ;;  %s2268_s8 = smov 40  }
   0xc   :  { %s2270_s9 = smov 8   ;;  %s2271_s10 = smov 16  }
   0xd   :  { %1996 = vmatmul.mubr.msk.f32.vlgmr.msra.gmra.mrb[0].mxu1 %vm36_vm0, %v2341_v8  ;;  %s2272_s11 = smov 24  }
   0xe   :  { %2000 = vmatprep.mubr.msk.f32.mxu1 %vm2257_vm1, %v2256_v9 }
  0xe0   :  { %v1997_v15 = vpop.f32.mrb[0].mxu1 }
  0xe1   :  { %v109_v16 = vpop.f32.mrb[1].mxu1  ;;  %v2363_v18 = vadd.f32 %v1997_v15, %v35_v14 }
  0xe2   :  { %v2360_v17 = vadd.f32 %v109_v16, %v35_v14 }
  0xe4   :  { %131 = vrot.lane.b32.xlu0 %v2360_v17, %s2258_s6 }
  0xe8   :  { %209 = vrot.lane.b32.xlu0 %v2363_v18, %s2258_s6 }
 0x156   :  { %v132_v19 = vpop.permute.xlu0 %131 }
 0x157   :  { %1999 = vmatpush3.xpose.msk.msra.mxu1 %vm133_vm2, %v132_v19 }
 0x158   :  { %2003 = vmatprep.subr.mxu1 %v2256_v9 }
 0x15a   :  { %2001 = vmatmul.mubr.msk.f32.vlgmr.msra.gmra.mrb[2].mxu1 %vm133_vm2, %v2360_v17  ;;  %v210_v20 = vpop.permute.xlu0 %209 }
 0x15b   :  { %2004 = vmatpush3.xpose.msk.msra.mxu1 %vm133_vm2, %v210_v20  ;;  %2005 = vmatprep.mubr.msk.f32.mxu1 %vm2257_vm1, %v2256_v9 }
 0x15c   :  { %2013 = vmatprep.subr.mxu1 %v2256_v9 }
 0x15e   :  { %2006 = vmatmul.mubr.msk.f32.vlgmr.msra.gmra.mrb[4].mxu1 %vm133_vm2, %v2363_v18 }
 0x15f   :  { %2015 = vmatprep.mubr.msk.f32.mxu1 %vm2257_vm1, %v2256_v9 }
 0x22d   :  { %v204_v23 = vpop.f32.mrb[2].mxu1 }
 0x22e   :  { %v285_v24 = vmul.f32 %v204_v23, %v118_v22  ;;  %v2002_v25 = vpop.f32.mrb[3].mxu1 }
 0x230   :  { %v287_v28 = vsel %vm128_vm3, -1e+30, %v285_v24 }
 0x231   :  { %v281_v29 = vpop.f32.mrb[4].mxu1  ;;  %v289_v30 = vsel %vm133_vm2, %v287_v28, -inf }
 0x232   :  { %v286_v31 = vmul.f32 %v281_v29, %v123_v27  ;;  %290 = vmax.xlane.f32.xlu1 %v289_v30  ;;  %v2007_v32 = vpop.f32.mrb[5].mxu1 }
 0x234   :  { %v288_v33 = vsel %vm129_vm4, -1e+30, %v286_v31 }
 0x235   :  { %v292_v34 = vsel %vm133_vm2, %v288_v33, -inf }
 0x236   :  { %293 = vmax.xlane.f32.xlu1 %v292_v34 }
 0x247   :  { %313 = vrot.lane.b32.xlu1 %v2360_v17, %s2259_s14 }
 0x24b   :  { %389 = vrot.lane.b32.xlu1 %v2363_v18, %s2259_s14 }
 0x24f   :  { %467 = vrot.lane.b32.xlu1 %v2360_v17, %s2260_s15 }
 0x253   :  { %545 = vrot.lane.b32.xlu1 %v2363_v18, %s2260_s15 }
 0x2bf   :  { %v291_v35 = vpop.xlane.xlu1 %290 }
 0x2c0   :  { %v295_v36 = vsub.f32 %v287_v28, %v291_v35 }
 0x2c2   :  { %v297_v37 = vmul.f32 1.442695, %v295_v36 }
 0x2c3   :  { %v294_v38 = vpop.xlane.xlu1 %293 }
 0x2c4   :  { %2188 = vpow2.f32 %v297_v37  ;;  %v296_v39 = vsub.f32 %v288_v33, %v294_v38 }
 0x2c6   :  { %v299_v40 = vmul.f32 1.442695, %v296_v39 }
 0x2c7   :  { %v314_v41 = vpop.permute.xlu1 %313 }
 0x2c8   :  { %2190 = vpow2.f32 %v299_v40  ;;  %2009 = vmatpush3.msra.mxu0 %v314_v41 }
 0x2c9   :  { %2018 = vmatprep.subr.mxu0 %v2256_v9 }
 0x2cb   :  { %v390_v42 = vpop.permute.xlu1 %389 }
 0x2cc   :  { %2014 = vmatpush3.msra.mxu1 %v390_v42 }
 0x2cd   :  { %2023 = vmatprep.subr.mxu1 %v2256_v9 }
 0x2ce   :  { %v2189_v43 = vpop.eup %2188 }
 0x2cf   :  { %v301_v44 = vsel %vm133_vm2, %v2189_v43, 0.0  ;;  %v468_v47 = vpop.permute.xlu1 %467 }
 0x2d0   :  { %302 = vadd.xlane.f32.xlu0 %v301_v44 }
 0x2d2   :  { %v2191_v45 = vpop.eup %2190 }
 0x2d3   :  { %v304_v46 = vsel %vm133_vm2, %v2191_v45, 0.0  ;;  %v546_v48 = vpop.permute.xlu1 %545 }
 0x2d4   :  { %305 = vadd.xlane.f32.xlu1 %v304_v46 }
 0x2e5   :  { %543 = vrot.lane.b32.xlu1 %v2363_v18, %s2261_s16 }
 0x2e6   :  { %465 = vrot.lane.b32.xlu0 %v2360_v17, %s2261_s16 }
 0x35d   :  { %v303_v49 = vpop.xlane.xlu0 %302 }
 0x35e   :  { %2192 = vrcp.f32 %v303_v49 }
 0x361   :  { %v306_v50 = vpop.xlane.xlu1 %305  ;;  %v466_v57 = vpop.permute.xlu0 %465 }
 0x362   :  { %2194 = vrcp.f32 %v306_v50 }
 0x365   :  { %v544_v58 = vpop.permute.xlu1 %543 }
 0x368   :  { %v2193_v51 = vpop.eup %2192 }
 0x369   :  { %v309_v52 = vmul.f32 %v2193_v51, %v2189_v43  ;;  %v120_v51 = vld [vmem:[%s2633_s1 + $0x10] sm:$0xff] }
 0x36b   :  { %v311_v53 = vmul.f32 %v309_v52, %v2381_v21 }
 0x36c   :  { %v2195_v54 = vpop.eup %2194 }
 0x36d   :  { %v310_v55 = vmul.f32 %v2195_v54, %v2191_v45  ;;  %2011 = vmatmul.mubr.msk.f32.vlgmr.msra.gmra.mrb[0].mxu0 %vm133_vm2, %v311_v53 }
 0x36e   :  { %2019 = vmatpush3.xpose.msk.msra.mxu0 %vm133_vm2, %v468_v47  ;;  %2020 = vmatprep.mubr.msk.f32.mxu0 %vm2257_vm1, %v2256_v9 }
 0x36f   :  { %v312_v56 = vmul.f32 %v310_v55, %v2390_v26  ;;  %2028 = vmatprep.subr.mxu0 %v2256_v9 }
 0x371   :  { %2016 = vmatmul.mubr.msk.f32.vlgmr.msra.gmra.mrb[6].mxu1 %vm133_vm2, %v312_v56  ;;  %2021 = vmatmul.mubr.msk.f32.vlgmr.msra.gmra.mrb[2].mxu0 %vm133_vm2, %v466_v57  ;;  %v125_v57 = vld [vmem:[%s2633_s1 + $0x38] sm:$0xff] }
 0x372   :  { %2024 = vmatpush3.xpose.msk.msra.mxu1 %vm133_vm2, %v546_v48  ;;  %2025 = vmatprep.mubr.msk.f32.mxu1 %vm2257_vm1, %v2256_v9 }
 0x373   :  { %2033 = vmatprep.subr.mxu1 %v2256_v9  ;;  %2030 = vmatprep.mubr.msk.f32.mxu0 %vm2257_vm1, %v2256_v9 }
 0x375   :  { %2026 = vmatmul.mubr.msk.f32.vlgmr.msra.gmra.mrb[8].mxu1 %vm133_vm2, %v544_v58 }
 0x376   :  { %2035 = vmatprep.mubr.msk.f32.mxu1 %vm2257_vm1, %v2256_v9 }
 0x440   :  { %v2430_v59 = vpop.f32.mrb[0].mxu0 }
 0x441   :  { %v2012_v60 = vpop.f32.mrb[1].mxu0 }
 0x444   :  { %v2435_v62 = vpop.f32.mrb[6].mxu1  ;;  %v539_v63 = vpop.f32.mrb[2].mxu0 }
 0x445   :  { %v621_v4 = vmul.f32 %v539_v63, %v119_v61  ;;  %v2017_v7 = vpop.f32.mrb[7].mxu1  ;;  %v2022_v10 = vpop.f32.mrb[3].mxu0 }
 0x447   :  { %v623_v14 = vsel %vm128_vm3, -1e+30, %v621_v4 }
 0x448   :  { %v617_v15 = vpop.f32.mrb[8].mxu1  ;;  %v625_v16 = vsel %vm133_vm2, %v623_v14, -inf }
 0x449   :  { %v622_v19 = vmul.f32 %v617_v15, %v124_v12  ;;  %v2027_v20 = vpop.f32.mrb[9].mxu1  ;;  %626 = vmax.xlane.f32.xlu1 %v625_v16 }
 0x44b   :  { %v624_v22 = vsel %vm129_vm4, -1e+30, %v622_v19 }
 0x44c   :  { %v628_v23 = vsel %vm133_vm2, %v624_v22, -inf }
 0x44d   :  { %629 = vmax.xlane.f32.xlu0 %v628_v23 }
 0x45a   :  { %649 = vrot.lane.b32.xlu1 %v2360_v17, %s2262_s21 }
 0x45e   :  { %803 = vrot.lane.b32.xlu1 %v2360_v17, %s2263_s22 }
 0x462   :  { %881 = vrot.lane.b32.xlu1 %v2363_v18, %s2263_s22 }
 0x463   :  { %725 = vrot.lane.b32.xlu0 %v2363_v18, %s2262_s21 }
 0x467   :  { %801 = vrot.lane.b32.xlu0 %v2360_v17, %s2264_s23 }
 0x4d6   :  { %v627_v24 = vpop.xlane.xlu1 %626 }
 0x4d7   :  { %v631_v25 = vsub.f32 %v623_v14, %v627_v24 }
 0x4d9   :  { %v633_v27 = vmul.f32 1.442695, %v631_v25 }
 0x4da   :  { %v650_v28 = vpop.permute.xlu1 %649  ;;  %v630_v29 = vpop.xlane.xlu0 %629 }
 0x4db   :  { %2196 = vpow2.f32 %v633_v27  ;;  %v632_v30 = vsub.f32 %v624_v22, %v630_v29  ;;  %2029 = vmatpush3.msra.mxu0 %v650_v28 }
 0x4dc   :  { %2038 = vmatprep.subr.mxu0 %v2256_v9 }
 0x4dd   :  { %v635_v31 = vmul.f32 1.442695, %v632_v30 }
 0x4de   :  { %v726_v32 = vpop.permute.xlu0 %725  ;;  %v804_v37 = vpop.permute.xlu1 %803 }
 0x4df   :  { %2198 = vpow2.f32 %v635_v31  ;;  %2034 = vmatpush3.msra.mxu1 %v726_v32 }
 0x4e0   :  { %2043 = vmatprep.subr.mxu1 %v2256_v9 }
 0x4e2   :  { %v882_v38 = vpop.permute.xlu1 %881  ;;  %v802_v47 = vpop.permute.xlu0 %801 }
 0x4e5   :  { %v2197_v33 = vpop.eup %2196 }
 0x4e6   :  { %v637_v34 = vsel %vm133_vm2, %v2197_v33, 0.0 }
 0x4e7   :  { %638 = vadd.xlane.f32.xlu1 %v637_v34 }
 0x4e9   :  { %v2199_v35 = vpop.eup %2198 }
 0x4ea   :  { %v640_v36 = vsel %vm133_vm2, %v2199_v35, 0.0 }
 0x4eb   :  { %641 = vadd.xlane.f32.xlu1 %v640_v36 }
 0x4fc   :  { %879 = vrot.lane.b32.xlu1 %v2363_v18, %s2264_s23 }
 0x574   :  { %v639_v39 = vpop.xlane.xlu1 %638 }
 0x575   :  { %2200 = vrcp.f32 %v639_v39 }
 0x578   :  { %v642_v40 = vpop.xlane.xlu1 %641 }
 0x579   :  { %2202 = vrcp.f32 %v642_v40 }
 0x57c   :  { %v880_v48 = vpop.permute.xlu1 %879 }
 0x57f   :  { %v2201_v41 = vpop.eup %2200 }
 0x580   :  { %v645_v42 = vmul.f32 %v2201_v41, %v2197_v33 }
 0x582   :  { %v647_v43 = vmul.f32 %v645_v42, %v2381_v21 }
 0x583   :  { %v2203_v44 = vpop.eup %2202 }
 0x584   :  { %v646_v45 = vmul.f32 %v2203_v44, %v2199_v35  ;;  %2031 = vmatmul.mubr.msk.f32.vlgmr.msra.gmra.mrb[4].mxu0 %vm133_vm2, %v647_v43  ;;  %v121_v43 = vld [vmem:[%s2633_s1 + $0x18] sm:$0xff] }
 0x585   :  { %2039 = vmatpush3.xpose.msk.msra.mxu0 %vm133_vm2, %v804_v37  ;;  %2040 = vmatprep.mubr.msk.f32.mxu0 %vm2257_vm1, %v2256_v9 }
 0x586   :  { %v648_v46 = vmul.f32 %v646_v45, %v2390_v26  ;;  %2048 = vmatprep.subr.mxu0 %v2256_v9 }
 0x588   :  { %2036 = vmatmul.mubr.msk.f32.vlgmr.msra.gmra.mrb[10].mxu1 %vm133_vm2, %v648_v46  ;;  %2041 = vmatmul.mubr.msk.f32.vlgmr.msra.gmra.mrb[6].mxu0 %vm133_vm2, %v802_v47 }
 0x589   :  { %2044 = vmatpush3.xpose.msk.msra.mxu1 %vm133_vm2, %v882_v38  ;;  %2045 = vmatprep.mubr.msk.f32.mxu1 %vm2257_vm1, %v2256_v9 }
 0x58a   :  { %2053 = vmatprep.subr.mxu1 %v2256_v9  ;;  %2050 = vmatprep.mubr.msk.f32.mxu0 %vm2257_vm1, %v2256_v9 }
 0x58c   :  { %2046 = vmatmul.mubr.msk.f32.vlgmr.msra.gmra.mrb[12].mxu1 %vm133_vm2, %v880_v48 }
 0x58d   :  { %2055 = vmatprep.mubr.msk.f32.mxu1 %vm2257_vm1, %v2256_v9 }
 0x657   :  { %v2474_v49 = vpop.f32.mrb[4].mxu0 }
 0x658   :  { %v2032_v50 = vpop.f32.mrb[5].mxu0 }
 0x659   :  { %v126_v50 = vld [vmem:[%s2633_s1 + $0x40] sm:$0xff]  ;;  %s2269_s1 = smov 32  }
 0x65b   :  { %v2479_v52 = vpop.f32.mrb[10].mxu1  ;;  %v875_v53 = vpop.f32.mrb[6].mxu0 }
 0x65c   :  { %v957_v54 = vmul.f32 %v875_v53, %v120_v51  ;;  %v2037_v55 = vpop.f32.mrb[11].mxu1  ;;  %v2042_v56 = vpop.f32.mrb[7].mxu0 }
 0x65e   :  { %v959_v58 = vsel %vm128_vm3, -1e+30, %v957_v54 }
 0x65f   :  { %v953_v60 = vpop.f32.mrb[12].mxu1  ;;  %v961_v61 = vsel %vm133_vm2, %v959_v58, -inf }
 0x660   :  { %v958_v63 = vmul.f32 %v953_v60, %v125_v57  ;;  %v2047_v4 = vpop.f32.mrb[13].mxu1  ;;  %962 = vmax.xlane.f32.xlu0 %v961_v61 }
 0x662   :  { %v960_v7 = vsel %vm129_vm4, -1e+30, %v958_v63 }
 0x663   :  { %v964_v10 = vsel %vm133_vm2, %v960_v7, -inf }
 0x664   :  { %965 = vmax.xlane.f32.xlu1 %v964_v10 }
 0x675   :  { %985 = vrot.lane.b32.xlu1 %v2360_v17, %s2265_s28 }
 0x679   :  { %1139 = vrot.lane.b32.xlu1 %v2360_v17, %s2266_s29 }
 0x67d   :  { %1217 = vrot.lane.b32.xlu1 %v2363_v18, %s2266_s29 }
 0x681   :  { %1215 = vrot.lane.b32.xlu1 %v2363_v18, %s2267_s0 }
 0x6ed   :  { %v963_v12 = vpop.xlane.xlu0 %962 }
 0x6ee   :  { %v967_v14 = vsub.f32 %v959_v58, %v963_v12  ;;  %v2183_v58 = vpack.i.bf16 %v2327_v5, %v2318_v2 }
 0x6f0   :  { %v969_v15 = vmul.f32 1.442695, %v967_v14 }
 0x6f1   :  { %v966_v16 = vpop.xlane.xlu1 %965 }
 0x6f2   :  { %2204 = vpow2.f32 %v969_v15  ;;  %v968_v19 = vsub.f32 %v960_v7, %v966_v16 }
 0x6f4   :  { %v971_v20 = vmul.f32 1.442695, %v968_v19 }
 0x6f5   :  { %v986_v22 = vpop.permute.xlu1 %985 }
 0x6f6   :  { %2206 = vpow2.f32 %v971_v20  ;;  %2049 = vmatpush3.msra.mxu0 %v986_v22 }
 0x6f7   :  { %2058 = vmatprep.subr.mxu0 %v2256_v9 }
 0x6f9   :  { %v1140_v32 = vpop.permute.xlu1 %1139 }
 0x6fc   :  { %v2205_v23 = vpop.eup %2204 }
 0x6fd   :  { %v973_v24 = vsel %vm133_vm2, %v2205_v23, 0.0  ;;  %v1218_v37 = vpop.permute.xlu1 %1217 }
 0x6fe   :  { %974 = vadd.xlane.f32.xlu0 %v973_v24 }
 0x700   :  { %v2207_v25 = vpop.eup %2206 }
 0x701   :  { %v976_v27 = vsel %vm133_vm2, %v2207_v25, 0.0  ;;  %v1216_v40 = vpop.permute.xlu1 %1215 }
 0x702   :  { %977 = vadd.xlane.f32.xlu0 %v976_v27 }
 0x718   :  { %1061 = vrot.lane.b32.xlu0 %v2363_v18, %s2265_s28 }
 0x71c   :  { %1137 = vrot.lane.b32.xlu0 %v2360_v17, %s2267_s0 }
 0x78b   :  { %v975_v28 = vpop.xlane.xlu0 %974 }
 0x78c   :  { %2208 = vrcp.f32 %v975_v28 }
 0x78f   :  { %v978_v29 = vpop.xlane.xlu0 %977 }
 0x790   :  { %2210 = vrcp.f32 %v978_v29 }
 0x793   :  { %v1062_v30 = vpop.permute.xlu0 %1061 }
 0x794   :  { %2054 = vmatpush3.msra.mxu1 %v1062_v30 }
 0x795   :  { %2063 = vmatprep.subr.mxu1 %v2256_v9 }
 0x796   :  { %v2209_v31 = vpop.eup %2208 }
 0x797   :  { %v981_v33 = vmul.f32 %v2209_v31, %v2205_v23  ;;  %v1138_v39 = vpop.permute.xlu0 %1137 }
 0x799   :  { %v983_v34 = vmul.f32 %v981_v33, %v2381_v21 }
 0x79a   :  { %v2211_v35 = vpop.eup %2210 }
 0x79b   :  { %v982_v36 = vmul.f32 %v2211_v35, %v2207_v25  ;;  %2051 = vmatmul.mubr.msk.f32.vlgmr.msra.gmra.mrb[8].mxu0 %vm133_vm2, %v983_v34 }
 0x79c   :  { %2059 = vmatpush3.xpose.msk.msra.mxu0 %vm133_vm2, %v1140_v32  ;;  %2060 = vmatprep.mubr.msk.f32.mxu0 %vm2257_vm1, %v2256_v9 }
 0x79d   :  { %v984_v38 = vmul.f32 %v982_v36, %v2390_v26  ;;  %2068 = vmatprep.subr.mxu0 %v2256_v9 }
 0x79f   :  { %2056 = vmatmul.mubr.msk.f32.vlgmr.msra.gmra.mrb[14].mxu1 %vm133_vm2, %v984_v38  ;;  %2061 = vmatmul.mubr.msk.f32.vlgmr.msra.gmra.mrb[10].mxu0 %vm133_vm2, %v1138_v39 }
 0x7a0   :  { %2064 = vmatpush3.xpose.msk.msra.mxu1 %vm133_vm2, %v1218_v37  ;;  %2065 = vmatprep.mubr.msk.f32.mxu1 %vm2257_vm1, %v2256_v9 }
 0x7a1   :  { %2073 = vmatprep.subr.mxu1 %v2256_v9  ;;  %2070 = vmatprep.mubr.msk.f32.mxu0 %vm2257_vm1, %v2256_v9 }
 0x7a3   :  { %2066 = vmatmul.mubr.msk.f32.vlgmr.msra.gmra.mrb[16].mxu1 %vm133_vm2, %v1216_v40 }
 0x7a4   :  { %2075 = vmatprep.mubr.msk.f32.mxu1 %vm2257_vm1, %v2256_v9 }
 0x86e   :  { %v1057_v41 = vpop.f32.mrb[8].mxu0 }
 0x86f   :  { %v2052_v42 = vpop.f32.mrb[9].mxu0 }
 0x872   :  { %v1133_v44 = vpop.f32.mrb[14].mxu1  ;;  %v1211_v45 = vpop.f32.mrb[10].mxu0 }
 0x873   :  { %v1293_v46 = vmul.f32 %v1211_v45, %v121_v43  ;;  %v2057_v47 = vpop.f32.mrb[15].mxu1  ;;  %v2062_v48 = vpop.f32.mrb[11].mxu0 }
 0x875   :  { %v1295_v51 = vsel %vm128_vm3, -1e+30, %v1293_v46 }
 0x876   :  { %v1289_v53 = vpop.f32.mrb[16].mxu1  ;;  %v1297_v9 = vsel %vm133_vm2, %v1295_v51, -inf }
 0x877   :  { %v1294_v54 = vmul.f32 %v1289_v53, %v126_v50  ;;  %v2067_v55 = vpop.f32.mrb[17].mxu1  ;;  %1298 = vmax.xlane.f32.xlu0 %v1297_v9 }
 0x879   :  { %v1296_v56 = vsel %vm129_vm4, -1e+30, %v1294_v54 }
 0x87a   :  { %v1300_v57 = vsel %vm133_vm2, %v1296_v56, -inf }
 0x87b   :  { %1301 = vmax.xlane.f32.xlu1 %v1300_v57 }
 0x88c   :  { %1321 = vrot.lane.b32.xlu1 %v2360_v17, %s2268_s8 }
 0x890   :  { %2179 = vrot.lane.b32.xlu1 %v2178_v3, %s2269_s1 }
 0x894   :  { %2184 = vrot.lane.b32.xlu1 %v2183_v58, %s2269_s1 }
 0x898   :  { %1477 = vrot.lane.b32.xlu1 %v2479_v52, %s2270_s9 }
 0x89c   :  { %1485 = vrot.lane.b32.xlu1 %v1133_v44, %s2271_s10  ;;  %v1507_v44 = vsub.s32 2, %v2347_v11 }
 0x89e   :  { %v1508_v45 = vrot.slane %v2357_v13, %v1507_v44 }
 0x904   :  { %v1299_v60 = vpop.xlane.xlu0 %1298 }
 0x905   :  { %v1303_v61 = vsub.f32 %v1295_v51, %v1299_v60 }
 0x907   :  { %v1305_v63 = vmul.f32 1.442695, %v1303_v61 }
 0x908   :  { %v1302_v4 = vpop.xlane.xlu1 %1301 }
 0x909   :  { %2212 = vpow2.f32 %v1305_v63  ;;  %v1304_v17 = vsub.f32 %v1296_v56, %v1302_v4  ;;  %v26_v4 = vld [vmem:[%s2634_s2 + $0x18] sm:$0xff] }
 0x90b   :  { %v1307_v7 = vmul.f32 1.442695, %v1304_v17 }
 0x90c   :  { %v1322_v10 = vpop.permute.xlu1 %1321 }
 0x90d   :  { %2214 = vpow2.f32 %v1307_v7  ;;  %2069 = vmatpush3.msra.mxu0 %v1322_v10  ;;  %v28_v7 = vld [vmem:[%s2634_s2 + $0x28] sm:$0xff]  ;;  %v30_v10 = vld [vmem:[%s2634_s2 + $0x38] sm:$0xff] }
 0x910   :  { %v2180_v0 = vpop.permute.xlu1 %2179 }
 0x911   :  { %v2182_v1 = vunpack.i.h.bf16 %v2180_v0  ;;  %v2181_v2 = vunpack.i.l.bf16 %v2180_v0  ;;  %v2139_v0 = vpack.c.bf16 %v30_v10, %v28_v7 }
 0x913   :  { %v2213_v3 = vpop.eup %2212  ;;  %v2127_v5 = vpack.c.bf16 %v2182_v1, %v2181_v2 }
 0x914   :  { %v1309_v12 = vsel %vm133_vm2, %v2213_v3, 0.0  ;;  %v2185_v20 = vpop.permute.xlu1 %2184 }
 0x915   :  { %1310 = vadd.xlane.f32.xlu0 %v1309_v12  ;;  %2128 = vmatprep.subr.bf16.mxu0 %v2127_v5  ;;  %v2187_v22 = vunpack.i.h.bf16 %v2185_v20  ;;  %v2186_v23 = vunpack.i.l.bf16 %v2185_v20 }
 0x917   :  { %v2215_v52 = vpop.eup %2214  ;;  %v2131_v27 = vpack.c.bf16 %v2187_v22, %v2186_v23 }
 0x918   :  { %v1312_v14 = vsel %vm133_vm2, %v2215_v52, 0.0 }
 0x919   :  { %1313 = vadd.xlane.f32.xlu0 %v1312_v14  ;;  %v1637_v14 = vsub.s32 3, %v2347_v11 }
 0x92f   :  { %1397 = vrot.lane.b32.xlu0 %v2363_v18, %s2268_s8 }
 0x933   :  { %1475 = vrot.lane.b32.xlu0 %v2474_v49, %s2270_s9 }
 0x937   :  { %1483 = vrot.lane.b32.xlu0 %v1057_v41, %s2271_s10 }
 0x9a2   :  { %v1311_v15 = vpop.xlane.xlu0 %1310 }
 0x9a3   :  { %2216 = vrcp.f32 %v1311_v15  ;;  %v1643_v15 = vsub.s32 4, %v2347_v11 }
 0x9a5   :  { %v1644_v22 = vrot.slane %v2357_v13, %v1643_v15 }
 0x9a6   :  { %v1314_v16 = vpop.xlane.xlu0 %1313 }
 0x9a7   :  { %2218 = vrcp.f32 %v1314_v16  ;;  %v1638_v16 = vrot.slane %v2357_v13, %v1637_v14 }
 0x9aa   :  { %v1398_v19 = vpop.permute.xlu0 %1397 }
 0x9ab   :  { %2074 = vmatpush3.msra.mxu1 %v1398_v19 }
 0x9ad   :  { %v2217_v24 = vpop.eup %2216 }
 0x9ae   :  { %v1317_v25 = vmul.f32 %v2217_v24, %v2213_v3  ;;  %v1476_v34 = vpop.permute.xlu0 %1475 }
 0x9af   :  { %v1497_v36 = vsel %vm133_vm2, %v2430_v59, %v1476_v34  ;;  %v1747_v34 = vld [vmem:[%s2635_s3 + $0x20] sm:$0xff] }
 0x9b0   :  { %v1319_v28 = vmul.f32 %v1317_v25, %v2381_v21  ;;  %v1478_v21 = vpop.permute.xlu1 %1477 }
 0x9b1   :  { %v2219_v29 = vpop.eup %2218  ;;  %v1498_v40 = vsel %vm133_vm2, %v2435_v62, %v1478_v21  ;;  %v1748_v21 = vld [vmem:[%s2635_s3 + $0x28] sm:$0xff] }
 0x9b2   :  { %v1318_v18 = vmul.f32 %v2219_v29, %v2215_v52  ;;  %2071 = vmatmul.mubr.msk.f32.vlgmr.msra.gmra.mrb[12].mxu0 %vm133_vm2, %v1319_v28  ;;  %v1484_v35 = vpop.permute.xlu0 %1483 }
 0x9b3   :  { %2130 = vmatpush3.bf16.msra.mxu0 %v2127_v5  ;;  %v1500_v37 = vsel %vm1499_vm6, %v1497_v36, %v1484_v35  ;;  %v2151_v35 = vpack.c.bf16 %v1748_v21, %v1747_v34  ;;  %v1749_v36 = vld [vmem:[%s2635_s3 + $0x30] sm:$0xff] }
 0x9b4   :  { %v1320_v49 = vmul.f32 %v1318_v18, %v2390_v26  ;;  %2132 = vmatprep.subr.bf16.mxu0 %v2131_v27  ;;  %v1486_v26 = vpop.permute.xlu1 %1485  ;;  %v1743_v18 = vld [vmem:[%s2635_s3] sm:$0xff] }
 0x9b5   :  { %v1501_v41 = vsel %vm1499_vm6, %v1498_v40, %v1486_v26  ;;  %v1750_v26 = vld [vmem:[%s2635_s3 + $0x38] sm:$0xff] }
 0x9b6   :  { %2076 = vmatmul.mubr.msk.f32.vlgmr.msra.gmra.mrb[18].mxu1 %vm133_vm2, %v1320_v49  ;;  %v1744_v49 = vld [vmem:[%s2635_s3 + $0x8] sm:$0xff] }
 0x9b7   :  { %2134 = vmatpush3.bf16.msra.mxu0 %v2131_v27 }
 0xa85   :  { %v1393_v30 = vpop.f32.mrb[12].mxu0 }
 0xa86   :  { %1491 = vrot.lane.b32.xlu0 %v1393_v30, %s2272_s11  ;;  %v2072_v31 = vpop.f32.mrb[13].mxu0  ;;  %v2143_v30 = vpack.c.bf16 %v1744_v49, %v1743_v18 }
 0xa87   :  { %v1745_v31 = vld [vmem:[%s2635_s3 + $0x10] sm:$0xff] }
 0xa88   :  { %2144 = vmatprep.subr.bf16.mxu0 %v2143_v30 }
 0xa89   :  { %v1469_v32 = vpop.f32.mrb[18].mxu1 }
 0xa8a   :  { %1493 = vrot.lane.b32.xlu1 %v1469_v32, %s2272_s11  ;;  %v2077_v33 = vpop.f32.mrb[19].mxu1  ;;  %v1746_v32 = vld [vmem:[%s2635_s3 + $0x18] sm:$0xff]  ;;  %s2273_s3 = smov [#allocation2]  }
 0xa8b   :  { %v2147_v33 = vpack.c.bf16 %v1746_v32, %v1745_v31  ;;  %s1884_s8 = sshll.u32 %s2273_s3, 4  ;;  %s1885_s8 = int_to_ptr.vmem [resolvable:$true] %s1884_s8 }
 0xa8c   :  { %s2232_s1 = scalar_lea.vmem %s1885_s8, 256  ;;  %p2237_p1 = scmp.lt.s32.totalorder %s1885_s8, %s1885_s8 }
 0xa8d   :  { %p2233_p0 = scmp.ne.s32.totalorder %s1885_s8, %s2232_s1  ;;  %p2238_p2 = scmp.lt.s32.totalorder %s2232_s1, %s2232_s1 }
 0xa8f   :  { %p2239_p3 = por %p2238_p2, %p2237_p1 }
 0xa91   :  { %p2240_p4 = pnand %p2239_p3, %p2233_p0 }
 0xaf8   :  { %v1492_v38 = vpop.permute.xlu0 %1491 }
 0xaf9   :  { %v1503_v39 = vsel %vm1502_vm5, %v1500_v37, %v1492_v38  ;;  %v2155_v37 = vpack.c.bf16 %v1750_v26, %v1749_v36  ;;  %v1649_v38 = vsub.s32 1, %v2347_v11 }
 0xafa   :  { %2086 = vmatprep.mubr.msk.f32.mxu0 %vm36_vm0, %v1503_v39 }
 0xafb   :  { %v1650_v39 = vrot.slane %v2357_v13, %v1649_v38 }
 0xafc   :  { %v1494_v42 = vpop.permute.xlu1 %1493 }
 0xafd   :  { %v1504_v43 = vsel %vm1502_vm5, %v1501_v41, %v1494_v42 }
 0xafe   :  { %2087 = vmatmul.mubr.msk.f32.vlgmr.msra.gmra.mrb[14].mxu0 %vm36_vm0, %v1504_v43 }
 0xaff   :  { %2146 = vmatpush3.bf16.msra.mxu0 %v2143_v30 }
 0xb00   :  { %2148 = vmatprep.subr.bf16.mxu0 %v2147_v33 }
 0xb03   :  { %2150 = vmatpush3.bf16.msra.mxu0 %v2147_v33 }
 0xb04   :  { %2152 = vmatprep.subr.bf16.mxu0 %v2151_v35 }
 0xb07   :  { %2154 = vmatpush3.bf16.msra.mxu0 %v2151_v35 }
 0xb08   :  { %2156 = vmatprep.subr.bf16.mxu0 %v2155_v37 }
 0xb0b   :  { %2158 = vmatpush3.bf16.msra.mxu0 %v2155_v37 }
 0xbd1   :  { %v2088_v46 = vpop.f32.mrb[14].mxu0 }
 0xbd2   :  { %v1603_v59 = vadd.f32 %v2088_v46, %v1508_v45  ;;  %v1597_v47 = vpop.f32.mrb[15].mxu0 }
 0xbd3   :  { %v1598_v48 = vadd.f32 %v1597_v47, %v1508_v45 }
 0xbd4   :  { %v1607_v50 = vadd.f32 %v1603_v59, %v2341_v8 }
 0xbd5   :  { %v1606_v51 = vadd.f32 %v1598_v48, %v2332_v6  ;;  %v24_v6 = vld [vmem:[%s2634_s2 + $0x8] sm:$0xff] }
 0xbd6   :  { %v1611_v53 = vsel %vm36_vm0, %v1607_v50, 0.0  ;;  %v2135_v17 = vpack.c.bf16 %v26_v4, %v24_v6 }
 0xbd7   :  { %1612 = vadd.xlane.f32.xlu1 %v1611_v53  ;;  %v1608_v62 = vsel %vm36_vm0, %v1606_v51, 0.0 }
 0xbd8   :  { %1609 = vadd.xlane.f32.xlu0 %v1608_v62  ;;  %2136 = vmatprep.subr.bf16.mxu1 %v2135_v17 }
 0xbd9   :  { %2138 = vmatpush3.bf16.msra.mxu1 %v2135_v17 }
 0xbda   :  { %2140 = vmatprep.subr.bf16.mxu1 %v2139_v0 }
 0xbdd   :  { %2142 = vmatpush3.bf16.msra.mxu1 %v2139_v0 }
 0xc64   :  { %v1613_v9 = vpop.xlane.xlu1 %1612 }
 0xc65   :  { %v1616_v54 = vmul.f32 0.03125, %v1613_v9  ;;  %v1610_v55 = vpop.xlane.xlu0 %1609  ;;  %v1753_v9 = vsub.s32 5, %v2347_v11 }
 0xc66   :  { %v1615_v56 = vmul.f32 0.03125, %v1610_v55 }
 0xc67   :  { %v1618_v57 = vsub.f32 %v1607_v50, %v1616_v54  ;;  %v1754_v54 = vrot.slane %v2357_v13, %v1753_v9 }
 0xc68   :  { %v1617_v58 = vsub.f32 %v1606_v51, %v1615_v56 }
 0xc69   :  { %v1620_v63 = vmul.f32 %v1618_v57, %v1618_v57 }
 0xc6a   :  { %v1619_v60 = vmul.f32 %v1617_v58, %v1617_v58 }
 0xc6b   :  { %v1624_v8 = vsel %vm36_vm0, %v1620_v63, 0.0 }
 0xc6c   :  { %v1621_v61 = vsel %vm36_vm0, %v1619_v60, 0.0 }
 0xc6d   :  { %1622 = vadd.xlane.f32.xlu0 %v1621_v61 }
 0xc71   :  { %1625 = vadd.xlane.f32.xlu0 %v1624_v8 }
 0xcfa   :  { %v1623_v1 = vpop.xlane.xlu0 %1622 }
 0xcfb   :  { %v1627_v2 = vmul.f32 0.03125, %v1623_v1 }
 0xcfd   :  { %v1629_v3 = vadd.f32 1e-07, %v1627_v2 }
 0xcfe   :  { %v1626_v5 = vpop.xlane.xlu0 %1625 }
 0xcff   :  { %2220 = vrsqrt.f32 %v1629_v3  ;;  %v1628_v12 = vmul.f32 0.03125, %v1626_v5 }
 0xd01   :  { %v1630_v52 = vadd.f32 1e-07, %v1628_v12 }
 0xd03   :  { %2222 = vrsqrt.f32 %v1630_v52 }
 0xd09   :  { %v2221_v19 = vpop.eup %2220 }
 0xd0a   :  { %v1633_v20 = vmul.f32 %v2221_v19, %v1617_v58 }
 0xd0c   :  { %v1639_v23 = vmul.f32 %v1638_v16, %v1633_v20  ;;  %v1867_v20 = vsub.s32 6, %v2347_v11 }
 0xd0d   :  { %v2223_v24 = vpop.eup %2222 }
 0xd0e   :  { %v1634_v25 = vmul.f32 %v2223_v24, %v1618_v57  ;;  %v1645_v27 = vadd.f32 %v1644_v22, %v1639_v23  ;;  %v1868_v23 = vrot.slane %v2357_v13, %v1867_v20 }
 0xd10   :  { %v1640_v28 = vmul.f32 %v1638_v16, %v1634_v25  ;;  %2097 = vmatprep.mubr.msk.f32.mxu1 %vm36_vm0, %v1645_v27 }
 0xd12   :  { %v1646_v29 = vadd.f32 %v1644_v22, %v1640_v28  ;;  %v1873_v22 = vsub.s32 7, %v2347_v11 }
 0xd14   :  { %2098 = vmatmul.mubr.msk.f32.vlgmr.msra.gmra.mrb[20].mxu1 %vm36_vm0, %v1646_v29  ;;  %v1874_v28 = vrot.slane %v2357_v13, %v1873_v22 }
 0xde7   :  { %v2099_v40 = vpop.f32.mrb[20].mxu1 }
 0xde8   :  { %v1729_v41 = vadd.f32 %v2099_v40, %v1650_v39  ;;  %v1723_v42 = vpop.f32.mrb[21].mxu1 }
 0xde9   :  { %v1724_v43 = vadd.f32 %v1723_v42, %v1650_v39 }
 0xdea   :  { %v1736_v44 = vmul.f32 0.70710677, %v1729_v41  ;;  %v1733_v51 = vmul.f32 0.5, %v1729_v41 }
 0xdeb   :  { %v1735_v45 = vmul.f32 0.70710677, %v1724_v43  ;;  %v1732_v48 = vmul.f32 0.5, %v1724_v43 }
 0xdec   :  { %2224 = verf.f32 %v1736_v44 }
 0xded   :  { %2226 = verf.f32 %v1735_v45 }
 0xdf6   :  { %v2225_v46 = vpop.eup %2224 }
 0xdf7   :  { %v2227_v59 = vpop.eup %2226  ;;  %v1740_v47 = vadd.f32 1.0, %v2225_v46 }
 0xdf8   :  { %v1739_v50 = vadd.f32 1.0, %v2227_v59 }
 0xdf9   :  { %v1742_v62 = vmul.f32 %v1740_v47, %v1733_v51 }
 0xdfa   :  { %v1741_v53 = vmul.f32 %v1739_v50, %v1732_v48 }
 0xdfc   :  { %2116 = vmatprep.mubr.msk.f32.mxu0 %vm1755_vm7, %v1741_v53 }
 0xdfd   :  { %2117 = vmatmul.mubr.msk.f32.vlgmr.msra.gmra.mrb[16].mxu0 %vm1755_vm7, %v1742_v62 }
 0xed0   :  { %v2118_v55 = vpop.f32.mrb[16].mxu0 }
 0xed1   :  { %v1834_v56 = vadd.f32 %v2118_v55, %v1754_v54  ;;  %v1828_v57 = vpop.f32.mrb[17].mxu0 }
 0xed2   :  { %v1829_v58 = vadd.f32 %v1828_v57, %v1754_v54 }
 0xed3   :  { %v1838_v60 = vadd.f32 %v1834_v56, %v1646_v29 }
 0xed4   :  { %v1837_v61 = vadd.f32 %v1829_v58, %v1645_v27 }
 0xed5   :  { %v1842_v63 = vsel %vm36_vm0, %v1838_v60, 0.0 }
 0xed6   :  { %1843 = vadd.xlane.f32.xlu0 %v1842_v63  ;;  %v1839_v8 = vsel %vm36_vm0, %v1837_v61, 0.0 }
 0xed7   :  { %1840 = vadd.xlane.f32.xlu1 %v1839_v8 }
 0xf63   :  { %v1844_v6 = vpop.xlane.xlu0 %1843 }
 0xf64   :  { %v1846_v4 = vmul.f32 0.03125, %v1844_v6  ;;  %v1841_v17 = vpop.xlane.xlu1 %1840 }
 0xf65   :  { %v1845_v7 = vmul.f32 0.03125, %v1841_v17 }
 0xf66   :  { %v1848_v10 = vsub.f32 %v1838_v60, %v1846_v4 }
 0xf67   :  { %v1847_v0 = vsub.f32 %v1837_v61, %v1845_v7 }
 0xf68   :  { %v1850_v1 = vmul.f32 %v1848_v10, %v1848_v10 }
 0xf69   :  { %v1849_v2 = vmul.f32 %v1847_v0, %v1847_v0 }
 0xf6a   :  { %v1854_v3 = vsel %vm36_vm0, %v1850_v1, 0.0 }
 0xf6b   :  { %1855 = vadd.xlane.f32.xlu0 %v1854_v3  ;;  %v1851_v5 = vsel %vm36_vm0, %v1849_v2, 0.0 }
 0xf6c   :  { %1852 = vadd.xlane.f32.xlu1 %v1851_v5 }
 0xff8   :  { %v1856_v12 = vpop.xlane.xlu0 %1855 }
 0xff9   :  { %v1858_v52 = vmul.f32 0.03125, %v1856_v12  ;;  %v1853_v14 = vpop.xlane.xlu1 %1852 }
 0xffa   :  { %v1857_v15 = vmul.f32 0.03125, %v1853_v14 }
 0xffb   :  { %v1860_v16 = vadd.f32 1e-07, %v1858_v52 }
 0xffc   :  { %v1859_v19 = vadd.f32 1e-07, %v1857_v15 }
 0xffd   :  { %2228 = vrsqrt.f32 %v1860_v16 }
 0xffe   :  { %2230 = vrsqrt.f32 %v1859_v19 }
0x1007   :  { %v2229_v24 = vpop.eup %2228 }
0x1008   :  { %v2231_v25 = vpop.eup %2230  ;;  %v1864_v27 = vmul.f32 %v2229_v24, %v1848_v10 }
0x1009   :  { %v1863_v29 = vmul.f32 %v2231_v25, %v1847_v0 }
0x100a   :  { %v1870_v18 = vmul.f32 %v1868_v23, %v1864_v27 }
0x100b   :  { %v1869_v49 = vmul.f32 %v1868_v23, %v1863_v29 }
0x100c   :  { %v1876_v30 = vadd.f32 %v1874_v28, %v1870_v18 }
0x100d   :  { %v1875_v31 = vadd.f32 %v1874_v28, %v1869_v49 }
0x100e   :  { %1878 = vst.msk [vmem:[#allocation2 + $0x8] sm:$0xff] %vm36_vm0, %v1876_v30 }
0x100f   :  { %1877 = vst.msk [vmem:[#allocation2] sm:$0xff] %vm36_vm0, %v1875_v31 }
0x1010   :  { %2243 = shalt.err (!%p2240_p4)
}
0x1011   :  { %s2244_s12 = scalar_lea.hbm %s2637_s5, 256 }
0x1012   :  { %p2245_p5 = scmp.ne.s32.totalorder %s2637_s5, %s2244_s12  ;;  %p2248_p6 = scmp.lt.u32.totalorder %s2244_s12, %s2637_s5 }
0x1014   :  { %p2250_p7 = pnand %p2248_p6, %p2245_p5 }
0x1016   :  { %2253 = shalt.err (!%p2250_p7)
}
0x1017   :  { %s2274_s17 = smov 128  }
0x1018   :  { %1890 = dma.vmem_to_hbm [thread:$0]  %s1885_s8, 256, %s2637_s5, [#allocation3], %s2274_s17, %s2274_s17, %s2270_s9  }
0x1019   :  { %2254 = dma.done.wait [#allocation3], 256  }
0x101a   :  { %2255 = vsyncadd [#allocation3], 4294967040 }
0x101b   :  { %1894 = vsyncpa [#allocation3], 1 }

</bundles_post_ra>
